<compile_context>
chip_gen: v7x
topology: tpu7x:2x2x1
jax: 0.10.0
libtpu: 0.0.40
codegen_flags: <defaults>
</compile_context>

<pallas_src>
import jax
import jax.numpy as jnp
from jax.experimental import pallas as pl
from jax.experimental.pallas import tpu as pltpu


def rel_pos_emb_kernel(x_ref, y_ref, d_ref, a_ref, w_ref, b_ref, o_ref):
    """Four exact-size MXU dots against one resident weight; single dense store."""
    w = w_ref[...]          # (S, h4)   resident across grid steps
    b = b_ref[...]          # (1, h4)   f32 bias row

    def emb(ref):
        return jnp.dot(ref[...], w, preferred_element_type=jnp.float32) + b

    # Lane-concat in-register (vreg shuffle, no HBM traffic), one full store.
    o_ref[...] = jnp.concatenate(
        [emb(x_ref), emb(y_ref), emb(d_ref), emb(a_ref)], axis=-1
    ).astype(o_ref.dtype)


def prepare_params(w_x, b_x):
    """One-time (init) parameter prep: PyTorch (out,in) weight -> (in,out); bias row."""
    return jnp.transpose(w_x), b_x.reshape(1, -1).astype(jnp.float32)


def _round_up(v, m):
    return ((v + m - 1) // m) * m


def relative_position_embeddings(x, y, distances, angles, w_t, b_row, *,
                                 block_rows=512, compute_dtype=None):
    """w_t: (seq, hidden//4) pre-transposed x-layer weight; b_row: (1, hidden//4)."""
    batch, seq = x.shape
    h4 = w_t.shape[1]
    hidden = 4 * h4

    if compute_dtype is not None:
        x, y, distances, angles = tuple(
            t.astype(compute_dtype) for t in (x, y, distances, angles))
        w_t = w_t.astype(compute_dtype)
    in_bytes = jnp.dtype(x.dtype).itemsize

    # --- Tile size: sublane-aligned; aim for >= 2 grid steps so v7x's second
    #     TensorCore gets work; cap by a VMEM budget that fits v7x (64 MiB).
    tile_b = min(block_rows, max(8, _round_up(pl.cdiv(batch, 2), 8)))

    def vmem_footprint(tb):
        act_in = 2 * 4 * tb * seq * in_bytes           # 4 inputs, double-buffered
        act_out = 2 * tb * hidden * 4                  # f32 output, double-buffered
        params = 2 * (seq * h4 * in_bytes + h4 * 4)    # resident weight + bias
        return act_in + act_out + params

    VMEM_BUDGET = 40 << 20                             # headroom on v7x (64 MiB physical)
    while tile_b > 8 and vmem_footprint(tile_b) > VMEM_BUDGET:
        tile_b = max(8, _round_up(tile_b // 2, 8))

    padded_batch = _round_up(batch, tile_b)
    if padded_batch != batch:                          # rare: batch not a tile multiple
        pad = padded_batch - batch
        x, y, distances, angles = tuple(
            jnp.pad(t, ((0, pad), (0, 0))) for t in (x, y, distances, angles))

    vmem_limit = int(min(56 << 20, max(vmem_footprint(tile_b) + (2 << 20), 16 << 20)))

    out = pl.pallas_call(
        rel_pos_emb_kernel,
        out_shape=jax.ShapeDtypeStruct((padded_batch, hidden), jnp.float32),
        grid=(padded_batch // tile_b,),
        in_specs=[
            pl.BlockSpec((tile_b, seq), lambda i: (i, 0)),   # x
            pl.BlockSpec((tile_b, seq), lambda i: (i, 0)),   # y
            pl.BlockSpec((tile_b, seq), lambda i: (i, 0)),   # distances
            pl.BlockSpec((tile_b, seq), lambda i: (i, 0)),   # angles
            pl.BlockSpec((seq, h4), lambda i: (0, 0)),       # shared weight (resident)
            pl.BlockSpec((1, h4), lambda i: (0, 0)),         # bias row (resident)
        ],
        out_specs=pl.BlockSpec((tile_b, hidden), lambda i: (i, 0)),
        compiler_params=pltpu.CompilerParams(
            dimension_semantics=("parallel",),
            vmem_limit_bytes=vmem_limit,
        ),
    )(x, y, distances, angles, w_t, b_row)

    return out[:batch] if padded_batch != batch else out


if __name__ == "__main__":
    # Small deterministic problem: sequence=8, hidden_size=32 (hidden//4 = 8),
    # batch of 8 "relative position" rows.
    sequence = 8
    hidden_size = 32
    batch = 8
    h4 = hidden_size // 4

    key = jax.random.PRNGKey(0)
    keys = jax.random.split(key, 12)

    # Inputs to forward()
    x = jax.random.normal(keys[0], (batch, sequence), dtype=jnp.float32)
    y = jax.random.normal(keys[1], (batch, sequence), dtype=jnp.float32)
    distances = jax.random.normal(keys[2], (batch, sequence), dtype=jnp.float32)
    angles = jax.random.normal(keys[3], (batch, sequence), dtype=jnp.float32)

    # Parameters (deterministic synthetic init). The module declares four
    # Linear(sequence, hidden//4) layers; only the `x` layer is used in forward.
    bound = 1.0 / jnp.sqrt(sequence)
    w_x = jax.random.uniform(keys[4], (h4, sequence), jnp.float32, -bound, bound)
    b_x = jax.random.uniform(keys[5], (h4,), jnp.float32, -bound, bound)
    # Unused-in-forward layers (kept for shape parity with __init__):
    w_y = jax.random.uniform(keys[6], (h4, sequence), jnp.float32, -bound, bound)
    b_y = jax.random.uniform(keys[7], (h4,), jnp.float32, -bound, bound)
    w_d = jax.random.uniform(keys[8], (h4, sequence), jnp.float32, -bound, bound)
    b_d = jax.random.uniform(keys[9], (h4,), jnp.float32, -bound, bound)
    w_a = jax.random.uniform(keys[10], (h4, sequence), jnp.float32, -bound, bound)
    b_a = jax.random.uniform(keys[11], (h4,), jnp.float32, -bound, bound)

    # One-time parameter prep (init-time, not per-call).
    w_t, b_row = prepare_params(w_x, b_x)

    out = relative_position_embeddings(x, y, distances, angles, w_t, b_row)
    out = jax.block_until_ready(out)

    # Pure-JAX reference (mirrors the PyTorch forward exactly, incl. the quirk
    # that all four inputs go through the x layer).
    def ref(inp):
        return inp @ w_x.T + b_x
    expected = jnp.concatenate([ref(x), ref(y), ref(distances), ref(angles)], axis=-1)

    assert out.shape == (batch, hidden_size)
    assert jnp.allclose(out, expected, atol=1e-5, rtol=1e-5)

    print("KERNEL_OK")
</pallas_src>

<mosaic_0001>
module attributes {stable_mosaic.version = 11 : i64} {
  func.func @rel_pos_emb_kernel(%arg0: i32, %arg1: memref<8x8xf32, #tpu.memory_space<vmem>>, %arg2: memref<8x8xf32, #tpu.memory_space<vmem>>, %arg3: memref<8x8xf32, #tpu.memory_space<vmem>>, %arg4: memref<8x8xf32, #tpu.memory_space<vmem>>, %arg5: memref<8x8xf32, #tpu.memory_space<vmem>>, %arg6: memref<1x8xf32, #tpu.memory_space<vmem>>, %arg7: memref<8x32xf32, #tpu.memory_space<vmem>>) attributes {dimension_semantics = [#tpu.dimension_semantics<parallel>], iteration_bounds = array<i64: 1>, scalar_prefetch = 0 : i64, scratch_operands = 0 : i64, tpu.core_type = #tpu.core_type<tc>, window_params = [{transform_indices = @transform_0, window_bounds = array<i64: 8, 8>}, {transform_indices = @transform_1, window_bounds = array<i64: 8, 8>}, {transform_indices = @transform_2, window_bounds = array<i64: 8, 8>}, {transform_indices = @transform_3, window_bounds = array<i64: 8, 8>}, {pipeline_mode = #tpu.pipeline_mode<synchronous>, transform_indices = @transform_4, window_bounds = array<i64: 8, 8>}, {pipeline_mode = #tpu.pipeline_mode<synchronous>, transform_indices = @transform_5, window_bounds = array<i64: 1, 8>}, {transform_indices = @transform_6, window_bounds = array<i64: 8, 32>}]} {
    %c0 = arith.constant 0 : index
    %c0_0 = arith.constant 0 : index
    %0 = vector.load %arg5[%c0, %c0_0] : memref<8x8xf32, #tpu.memory_space<vmem>>, vector<8x8xf32>
    %c0_1 = arith.constant 0 : index
    %c0_2 = arith.constant 0 : index
    %1 = vector.load %arg6[%c0_1, %c0_2] : memref<1x8xf32, #tpu.memory_space<vmem>>, vector<1x8xf32>
    %c0_3 = arith.constant 0 : index
    %c0_4 = arith.constant 0 : index
    %2 = vector.load %arg1[%c0_3, %c0_4] : memref<8x8xf32, #tpu.memory_space<vmem>>, vector<8x8xf32>
    %cst = arith.constant dense<0.000000e+00> : vector<8x8xf32>
    %3 = tpu.matmul %2, %0, %cst {dimension_numbers = #tpu.dot_dimension_numbers<[1], [0], [0], [1], [0, 0, 1, 1], [], []>} : vector<8x8xf32>, vector<8x8xf32>, vector<8x8xf32> -> vector<8x8xf32>
    %4 = vector.broadcast %1 : vector<1x8xf32> to vector<8x8xf32>
    %5 = arith.addf %3, %4 : vector<8x8xf32>
    %c0_5 = arith.constant 0 : index
    %c0_6 = arith.constant 0 : index
    %6 = vector.load %arg2[%c0_5, %c0_6] : memref<8x8xf32, #tpu.memory_space<vmem>>, vector<8x8xf32>
    %cst_7 = arith.constant dense<0.000000e+00> : vector<8x8xf32>
    %7 = tpu.matmul %6, %0, %cst_7 {dimension_numbers = #tpu.dot_dimension_numbers<[1], [0], [0], [1], [0, 0, 1, 1], [], []>} : vector<8x8xf32>, vector<8x8xf32>, vector<8x8xf32> -> vector<8x8xf32>
    %8 = vector.broadcast %1 : vector<1x8xf32> to vector<8x8xf32>
    %9 = arith.addf %7, %8 : vector<8x8xf32>
    %c0_8 = arith.constant 0 : index
    %c0_9 = arith.constant 0 : index
    %10 = vector.load %arg3[%c0_8, %c0_9] : memref<8x8xf32, #tpu.memory_space<vmem>>, vector<8x8xf32>
    %cst_10 = arith.constant dense<0.000000e+00> : vector<8x8xf32>
    %11 = tpu.matmul %10, %0, %cst_10 {dimension_numbers = #tpu.dot_dimension_numbers<[1], [0], [0], [1], [0, 0, 1, 1], [], []>} : vector<8x8xf32>, vector<8x8xf32>, vector<8x8xf32> -> vector<8x8xf32>
    %12 = vector.broadcast %1 : vector<1x8xf32> to vector<8x8xf32>
    %13 = arith.addf %11, %12 : vector<8x8xf32>
    %c0_11 = arith.constant 0 : index
    %c0_12 = arith.constant 0 : index
    %14 = vector.load %arg4[%c0_11, %c0_12] : memref<8x8xf32, #tpu.memory_space<vmem>>, vector<8x8xf32>
    %cst_13 = arith.constant dense<0.000000e+00> : vector<8x8xf32>
    %15 = tpu.matmul %14, %0, %cst_13 {dimension_numbers = #tpu.dot_dimension_numbers<[1], [0], [0], [1], [0, 0, 1, 1], [], []>} : vector<8x8xf32>, vector<8x8xf32>, vector<8x8xf32> -> vector<8x8xf32>
    %16 = vector.broadcast %1 : vector<1x8xf32> to vector<8x8xf32>
    %17 = arith.addf %15, %16 : vector<8x8xf32>
    %18 = tpu.concatenate %5, %9, %13, %17 in 1 : vector<8x8xf32>, vector<8x8xf32>, vector<8x8xf32>, vector<8x8xf32> -> vector<8x32xf32>
    %c0_14 = arith.constant 0 : index
    %c0_15 = arith.constant 0 : index
    %19 = vector.load %arg7[%c0_14, %c0_15] : memref<8x32xf32, #tpu.memory_space<vmem>>, vector<8x32xf32>
    tpu.vector_store %arg7[%c0_14, %c0_15], %18 {strides = array<i32>} : memref<8x32xf32, #tpu.memory_space<vmem>>, vector<8x32xf32>,
    return
  }
  func.func @transform_0(%arg0: i32) -> (i32, i32) {
    %c0_i32 = arith.constant 0 : i32
    %c0_i32_0 = arith.constant 0 : i32
    return %arg0, %c0_i32 : i32, i32
  }
  func.func @transform_1(%arg0: i32) -> (i32, i32) {
    %c0_i32 = arith.constant 0 : i32
    %c0_i32_0 = arith.constant 0 : i32
    return %arg0, %c0_i32 : i32, i32
  }
  func.func @transform_2(%arg0: i32) -> (i32, i32) {
    %c0_i32 = arith.constant 0 : i32
    %c0_i32_0 = arith.constant 0 : i32
    return %arg0, %c0_i32 : i32, i32
  }
  func.func @transform_3(%arg0: i32) -> (i32, i32) {
    %c0_i32 = arith.constant 0 : i32
    %c0_i32_0 = arith.constant 0 : i32
    return %arg0, %c0_i32 : i32, i32
  }
  func.func @transform_4(%arg0: i32) -> (i32, i32) {
    %c0_i32 = arith.constant 0 : i32
    %c0_i32_0 = arith.constant 0 : i32
    %c0_i32_1 = arith.constant 0 : i32
    return %c0_i32, %c0_i32_0 : i32, i32
  }
  func.func @transform_5(%arg0: i32) -> (i32, i32) {
    %c0_i32 = arith.constant 0 : i32
    %c0_i32_0 = arith.constant 0 : i32
    %c0_i32_1 = arith.constant 0 : i32
    return %c0_i32, %c0_i32_0 : i32, i32
  }
  func.func @transform_6(%arg0: i32) -> (i32, i32) {
    %c0_i32 = arith.constant 0 : i32
    %c0_i32_0 = arith.constant 0 : i32
    return %arg0, %c0_i32 : i32, i32
  }
}

</mosaic_0001>

<bundles_post_ra>
// kernel: tpu_custom_call.1
= control target key start
LH: loop header
LB: loop body
LE: loop exit
PB: predicated region body
PF: predicated region fallthrough
CT: control target
= control target key end

     0   :  { %11 = vsyncpa [#allocation3], 0  ;;  %s693_s0 = inlined_call_operand.hbm [shape: f32[8,8], index: 0, kind: input, shape index: {}]   ;;  %s694_s1 = inlined_call_operand.hbm [shape: f32[8,8], index: 1, kind: input, shape index: {}]   ;;  %s695_s2 = inlined_call_operand.hbm [shape: f32[8,8], index: 2, kind: input, shape index: {}]   ;;  %s696_s3 = inlined_call_operand.vmem [shape: f32[8,8], index: 3, kind: input, shape index: {}]   ;;  %s697_s4 = inlined_call_operand.hbm [shape: f32[8,8], index: 4, kind: input, shape index: {}]   ;;  %s698_s5 = inlined_call_operand.vmem [shape: f32[1,8], index: 5, kind: input, shape index: {}]   ;;  %s699_s6 = inlined_call_operand.hbm [shape: f32[8,32], index: 6, kind: output, shape index: {}]  }
   0x1   :  { %12 = vsyncpa [#allocation6], 0 }
   0x2   :  { %13 = vsyncpa [#allocation9], 0 }
   0x3   :  { %14 = vsyncpa [#allocation4], 0  ;;  %s573_s21 = smov [#allocation5]   ;;  %s574_s23 = smov [#allocation2]  }
   0x4   :  { %s31_s22 = sshll.u32 %s573_s21, 4  ;;  %s21_s24 = sshll.u32 %s574_s23, 4  ;;  %s32_s22 = int_to_ptr.vmem [resolvable:$true] %s31_s22  ;;  %s22_s24 = int_to_ptr.vmem [resolvable:$true] %s21_s24 }
   0x5   :  { %s455_s27 = scalar_lea.hbm %s694_s1, 128 }
   0x6   :  { %p456_p0 = scmp.ne.s32.totalorder %s694_s1, %s455_s27  ;;  %p459_p1 = scmp.lt.u32.totalorder %s455_s27, %s694_s1 }
   0x8   :  { %p461_p2 = pnand %p459_p1, %p456_p0 }
   0xa   :  { %464 = shalt.err (!%p461_p2)
}
   0xb   :  { %s465_s8 = scalar_lea.vmem %s32_s22, 128  ;;  %p470_p4 = scmp.lt.s32.totalorder %s32_s22, %s32_s22 }
   0xc   :  { %p466_p3 = scmp.ne.s32.totalorder %s32_s22, %s465_s8  ;;  %p471_p5 = scmp.lt.s32.totalorder %s465_s8, %s465_s8 }
   0xe   :  { %p472_p6 = por %p471_p5, %p470_p4 }
  0x10   :  { %p473_p7 = pnand %p472_p6, %p466_p3 }
  0x12   :  { %476 = shalt.err (!%p473_p7)
}
  0x13   :  { %34 = dma.hbm_to_vmem [thread:$0]  %s694_s1, 128, %s32_s22, [#allocation6]  }
  0x14   :  { %s477_s13 = scalar_lea.hbm %s693_s0, 128 }
  0x15   :  { %p478_p8 = scmp.ne.s32.totalorder %s693_s0, %s477_s13  ;;  %p481_p9 = scmp.lt.u32.totalorder %s477_s13, %s693_s0 }
  0x17   :  { %p483_p10 = pnand %p481_p9, %p478_p8 }
  0x19   :  { %486 = shalt.err (!%p483_p10)
}
  0x1a   :  { %s487_s18 = scalar_lea.vmem %s22_s24, 128  ;;  %p492_p12 = scmp.lt.s32.totalorder %s22_s24, %s22_s24 }
  0x1b   :  { %p488_p11 = scmp.ne.s32.totalorder %s22_s24, %s487_s18  ;;  %p493_p13 = scmp.lt.s32.totalorder %s487_s18, %s487_s18 }
  0x1d   :  { %p494_p0 = por %p493_p13, %p492_p12 }
  0x1f   :  { %p495_p1 = pnand %p494_p0, %p488_p11 }
  0x21   :  { %498 = shalt.err (!%p495_p1)
}
  0x22   :  { %24 = dma.hbm_to_vmem [thread:$0]  %s693_s0, 128, %s22_s24, [#allocation3]  }
  0x23   :  { %s575_s20 = smov [#allocation7]   ;;  %s576_s22 = smov [#allocation8]  }
  0x24   :  { %s41_s21 = sshll.u32 %s575_s20, 4  ;;  %s53_s23 = sshll.u32 %s576_s22, 4  ;;  %s42_s21 = int_to_ptr.vmem [resolvable:$true] %s41_s21  ;;  %s54_s23 = int_to_ptr.vmem [resolvable:$true] %s53_s23 }
  0x25   :  { %s499_s27 = scalar_lea.hbm %s695_s2, 128 }
  0x26   :  { %p500_p2 = scmp.ne.s32.totalorder %s695_s2, %s499_s27  ;;  %p503_p3 = scmp.lt.u32.totalorder %s499_s27, %s695_s2 }
  0x28   :  { %p505_p4 = pnand %p503_p3, %p500_p2 }
  0x2a   :  { %508 = shalt.err (!%p505_p4)
}
  0x2b   :  { %s509_s0 = scalar_lea.vmem %s42_s21, 128  ;;  %p514_p6 = scmp.lt.s32.totalorder %s42_s21, %s42_s21 }
  0x2c   :  { %p510_p5 = scmp.ne.s32.totalorder %s42_s21, %s509_s0  ;;  %p515_p7 = scmp.lt.s32.totalorder %s509_s0, %s509_s0 }
  0x2e   :  { %p516_p8 = por %p515_p7, %p514_p6 }
  0x30   :  { %p517_p9 = pnand %p516_p8, %p510_p5 }
  0x32   :  { %520 = shalt.err (!%p517_p9)
}
  0x33   :  { %44 = dma.hbm_to_vmem [thread:$0]  %s695_s2, 128, %s42_s21, [#allocation6]  }
  0x34   :  { %s521_s11 = scalar_lea.hbm %s697_s4, 128 }
  0x35   :  { %p522_p10 = scmp.ne.s32.totalorder %s697_s4, %s521_s11  ;;  %p525_p11 = scmp.lt.u32.totalorder %s521_s11, %s697_s4 }
  0x37   :  { %p527_p12 = pnand %p525_p11, %p522_p10 }
  0x39   :  { %530 = shalt.err (!%p527_p12)
}
  0x3a   :  { %s531_s16 = scalar_lea.vmem %s54_s23, 128  ;;  %p536_p0 = scmp.lt.s32.totalorder %s54_s23, %s54_s23 }
  0x3b   :  { %p532_p13 = scmp.ne.s32.totalorder %s54_s23, %s531_s16  ;;  %p537_p1 = scmp.lt.s32.totalorder %s531_s16, %s531_s16 }
  0x3d   :  { %p538_p2 = por %p537_p1, %p536_p0 }
  0x3f   :  { %p539_p3 = pnand %p538_p2, %p532_p13 }
  0x41   :  { %542 = shalt.err (!%p539_p3)
}
  0x42   :  { %56 = dma.hbm_to_vmem [thread:$0]  %s697_s4, 128, %s54_s23, [#allocation9]  }
  0x43   :  { %565 = dma.done.wait [#allocation3], 128  }
  0x44   :  { %566 = vsyncadd [#allocation3], 4294967168 }
  0x45   :  { %567 = dma.done.wait [#allocation6], 256  }
  0x46   :  { %568 = vsyncadd [#allocation6], 4294967040 }
  0x47   :  { %569 = dma.done.wait [#allocation9], 128  }
  0x48   :  { %570 = vsyncadd [#allocation9], 4294967168  ;;  %v577_v0 = vmov 0.0   ;;  %vm578_vm0 = vmmov 0   ;;  %vm80_vm1 = vcmask 64512   ;;  %v71_v1 = vld [vmem:[#allocation8] sm:$0xff] }
  0x49   :  { %425 = vmatprep.subr.mxu0 %v577_v0  ;;  %430 = vmatprep.subr.mxu1 %v577_v0  ;;  %v73_v2 = vld [vmem:[#allocation2] sm:$0xff]  ;;  %v154_v3 = vld [vmem:[#allocation5] sm:$0xff]  ;;  %v228_v4 = vld [vmem:[#allocation7] sm:$0xff]  ;;  %s580_s20 = smov 16   ;;  %s581_s21 = smov 24   ;;  %vm389_vm2 = vcmask 130048  }
  0x4a   :  { %427 = vmatprep.mubr.msk.f32.mxu0 %vm578_vm0, %v577_v0  ;;  %432 = vmatprep.mubr.msk.f32.mxu1 %vm578_vm0, %v577_v0  ;;  %v302_v5 = vld [vmem:[%s696_s3] sm:$0xff]  ;;  %s579_s3 = smov 8   ;;  %vm391_vm3 = vcmask 195584   ;;  %vm393_vm4 = vcmask 261120  }
  0x4b   :  { %426 = vmatpush3.msra.mxu0 %v71_v1  ;;  %431 = vmatpush3.msra.mxu1 %v71_v1  ;;  %v412_v6 = vld [vmem:[%s698_s5] ss:$0 sm:$0xff]  ;;  %s582_s5 = smov [#allocation10]  }
  0x4c   :  { %428 = vmatmul.mubr.msk.f32.vlgmr.msra.gmra.mrb[0].mxu0 %vm80_vm1, %v73_v2  ;;  %433 = vmatmul.mubr.msk.f32.vlgmr.msra.gmra.mrb[0].mxu1 %vm80_vm1, %v154_v3  ;;  %s401_s22 = sshll.u32 %s582_s5, 4  ;;  %s402_s22 = int_to_ptr.vmem [resolvable:$true] %s401_s22 }
  0x4d   :  { %435 = vmatprep.subr.mxu0 %v577_v0  ;;  %440 = vmatprep.subr.mxu1 %v577_v0  ;;  %s543_s23 = scalar_lea.vmem %s402_s22, 128  ;;  %p548_p5 = scmp.lt.s32.totalorder %s402_s22, %s402_s22 }
  0x4e   :  { %436 = vmatpush3.msra.mxu0 %v71_v1  ;;  %441 = vmatpush3.msra.mxu1 %v71_v1  ;;  %p544_p4 = scmp.ne.s32.totalorder %s402_s22, %s543_s23  ;;  %p549_p6 = scmp.lt.s32.totalorder %s543_s23, %s543_s23 }
  0x4f   :  { %437 = vmatprep.mubr.msk.f32.mxu0 %vm578_vm0, %v577_v0  ;;  %442 = vmatprep.mubr.msk.f32.mxu1 %vm578_vm0, %v577_v0 }
  0x50   :  { %438 = vmatmul.mubr.msk.f32.vlgmr.msra.gmra.mrb[2].mxu0 %vm80_vm1, %v228_v4  ;;  %443 = vmatmul.mubr.msk.f32.vlgmr.msra.gmra.mrb[2].mxu1 %vm80_vm1, %v302_v5  ;;  %p550_p7 = por %p549_p6, %p548_p5 }
  0x52   :  { %p551_p8 = pnand %p550_p7, %p544_p4 }
 0x11f   :  { %v150_v7 = vpop.f32.mrb[0].mxu0  ;;  %v224_v8 = vpop.f32.mrb[0].mxu1 }
 0x120   :  { %v151_v9 = vadd.f32 %v412_v6, %v150_v7  ;;  %v225_v10 = vadd.f32 %v412_v6, %v224_v8  ;;  %v429_v11 = vpop.f32.mrb[1].mxu0  ;;  %v434_v12 = vpop.f32.mrb[1].mxu1 }
 0x122   :  { %377 = vrot.lane.b32.xlu0 %v225_v10, %s579_s3 }
 0x123   :  { %v298_v13 = vpop.f32.mrb[2].mxu0  ;;  %v372_v14 = vpop.f32.mrb[2].mxu1 }
 0x124   :  { %v299_v15 = vadd.f32 %v412_v6, %v298_v13  ;;  %v439_v16 = vpop.f32.mrb[3].mxu0  ;;  %v373_v17 = vadd.f32 %v412_v6, %v372_v14  ;;  %v444_v18 = vpop.f32.mrb[3].mxu1 }
 0x126   :  { %381 = vrot.lane.b32.xlu0 %v299_v15, %s580_s20  ;;  %385 = vrot.lane.b32.xlu1 %v373_v17, %s581_s21 }
 0x194   :  { %v378_v19 = vpop.permute.xlu0 %377 }
 0x195   :  { %v388_v20 = vsel %vm80_vm1, %v151_v9, %v378_v19 }
 0x198   :  { %v382_v21 = vpop.permute.xlu0 %381  ;;  %v386_v22 = vpop.permute.xlu1 %385 }
 0x199   :  { %v390_v23 = vsel %vm389_vm2, %v388_v20, %v382_v21 }
 0x19a   :  { %v392_v24 = vsel %vm391_vm3, %v390_v23, %v386_v22 }
 0x19b   :  { %394 = vst.msk [vmem:[#allocation10] sm:$0xff] %vm393_vm4, %v392_v24 }
 0x19c   :  { %554 = shalt.err (!%p551_p8)
}
 0x19d   :  { %s555_s27 = scalar_lea.hbm %s699_s6, 128 }
 0x19e   :  { %p556_p9 = scmp.ne.s32.totalorder %s699_s6, %s555_s27  ;;  %p559_p10 = scmp.lt.u32.totalorder %s555_s27, %s699_s6 }
 0x1a0   :  { %p561_p11 = pnand %p559_p10, %p556_p9 }
 0x1a2   :  { %564 = shalt.err (!%p561_p11)
}
 0x1a3   :  { %404 = dma.vmem_to_hbm [thread:$0]  %s402_s22, 128, %s699_s6, [#allocation4]  }
 0x1a4   :  { %571 = dma.done.wait [#allocation4], 128  }
 0x1a5   :  { %572 = vsyncadd [#allocation4], 4294967168 }
 0x1a6   :  { %408 = vsyncpa [#allocation3], 1 }
 0x1a7   :  { %409 = vsyncpa [#allocation6], 1 }
 0x1a8   :  { %410 = vsyncpa [#allocation9], 1 }
 0x1a9   :  { %411 = vsyncpa [#allocation4], 1 }

</bundles_post_ra>
